<compile_context>
chip_gen: v5e
topology: v5e:2x2
jax: 0.10.0
libtpu: 0.0.40
codegen_flags: <defaults>
</compile_context>

<pallas_src>
import functools

import jax
import jax.numpy as jnp
from jax.experimental import pallas as pl
from jax.experimental.pallas import tpu as pltpu


def _round_up(a, b):
    return (a + b - 1) // b * b


# ---------------------------------------------------------------------------
# Stage 1: global average + max pooling over the spatial axis (HBM-bound).
# ---------------------------------------------------------------------------
def _pool_kernel(x_ref, avg_ref, max_ref, *, inv_hw):
    x = x_ref[...].astype(jnp.float32)          # lane extent == HW, no mask needed
    s = jnp.sum(x, axis=-1, keepdims=True)
    m = jnp.max(x, axis=-1, keepdims=True)
    avg_ref[...] = (s * inv_hw).astype(avg_ref.dtype)   # per-row scale, no divide
    max_ref[...] = m.astype(max_ref.dtype)


def _choose_row_tile(nc, hw, itemsize, sublane_pack):
    try:
        vmem_bytes = int(pltpu.get_tpu_info().vmem_capacity_bytes)
    except Exception:  # be robust if the query is unavailable
        vmem_bytes = 64 * 1024 * 1024
    # Double-buffered input-stream budget:
    #   v5e/v6e (128 MiB physical VMEM) -> ~40 MiB; v7x (64 MiB per TC) -> 16 MiB.
    budget = 40 * 1024 * 1024 if vmem_bytes >= 100 * 1024 * 1024 else 16 * 1024 * 1024
    bytes_per_row = max(1, hw * itemsize)
    tr = max(1, budget // (2 * bytes_per_row))          # 2 = pipeline buffers
    tr = max(sublane_pack, (tr // sublane_pack) * sublane_pack)
    tr = min(tr, _round_up(nc, sublane_pack))
    # Prefer >= 8 grid steps (>= 2 pipelined steps per TensorCore under megacore
    # sharding) while keeping tiles in the bandwidth-efficient range (>= ~1 MiB).
    while (pl.cdiv(nc, tr) < 8
           and tr >= 2 * sublane_pack
           and (tr // 2) * bytes_per_row >= (1 << 20)):
        tr = max(sublane_pack, (tr // 2 // sublane_pack) * sublane_pack)
    # Scoped-VMEM limit derived from the chosen tile: double-buffered input,
    # f32 working copy, tiny outputs, plus headroom (floored at 16 MiB).
    vmem_limit = 2 * tr * bytes_per_row + tr * hw * 4 + (4 << 20)
    vmem_limit = int(min(max(vmem_limit, 16 * 1024 * 1024), vmem_bytes))
    return tr, vmem_limit


def _global_pools(x):
    """x: (N, C, H, W) -> (avg (N, C) f32, max (N, C) f32)."""
    N, C, H, W = x.shape
    NC, HW = N * C, H * W

    x2 = x.reshape(NC, HW)                      # contiguous reshape, no copy

    itemsize = x2.dtype.itemsize
    pack = max(8, 32 // itemsize)               # f32 -> 8, bf16 -> 16, int8/fp8 -> 32
    tr, vmem_limit = _choose_row_tile(NC, HW, itemsize, pack)

    grid = (pl.cdiv(NC, tr),)
    avg2, max2 = pl.pallas_call(
        functools.partial(_pool_kernel, inv_hw=1.0 / float(HW)),
        out_shape=(
            jax.ShapeDtypeStruct((NC, 1), jnp.float32),
            jax.ShapeDtypeStruct((NC, 1), jnp.float32),
        ),
        grid_spec=pltpu.PrefetchScalarGridSpec(
            num_scalar_prefetch=0,
            grid=grid,
            # Last block dim equals the FULL array dim (HW), so no lane padding
            # and no host-side jnp.pad; the tail row-block is a partial block.
            in_specs=[pl.BlockSpec((tr, HW), lambda i: (i, 0))],
            out_specs=[
                pl.BlockSpec((tr, 1), lambda i: (i, 0)),
                pl.BlockSpec((tr, 1), lambda i: (i, 0)),
            ],
        ),
        compiler_params=pltpu.CompilerParams(
            dimension_semantics=("parallel",),
            vmem_limit_bytes=vmem_limit,
        ),
    )(x2)

    avg = avg2[:, 0].reshape(N, C)
    mx = max2[:, 0].reshape(N, C)
    return avg, mx


# ---------------------------------------------------------------------------
# Stage 2: shared bottleneck MLP (Linear -> ReLU -> Linear) + sigmoid,
# with the two branches folded into a single pass over the weights.
# ---------------------------------------------------------------------------
def _bottleneck_kernel(pools_ref, w1_ref, b1_ref, w2_ref, b2_ref, o_ref, *, half_rows):
    # pools = [avg_padded ; max_padded] stacked along rows: (2*half_rows, C_pad)
    h = jnp.dot(pools_ref[...], w1_ref[...],
                preferred_element_type=jnp.float32) + b1_ref[...]
    h = jnp.maximum(h, 0.0)
    # ReLU prevents folding earlier, but the second linear is additive:
    #   mlp(avg)+mlp(max) = (relu(avg@W1+b1)+relu(max@W1+b1)) @ W2 + 2*b2
    h = h[:half_rows, :] + h[half_rows:, :]
    logits = jnp.dot(h, w2_ref[...],
                     preferred_element_type=jnp.float32) + 2.0 * b2_ref[...]
    o_ref[...] = 1.0 / (1.0 + jnp.exp(-logits))


def channel_attention_nopara(x, W1, b1, W2, b2):
    """Forward of ChannelAttention_nopara.

    x : (N, C, H, W)
    W1: (mid, C), b1: (mid,)   -- torch nn.Linear layout (out_features, in_features)
    W2: (C, mid), b2: (C,)
    returns (N, C, 1, 1), dtype of x.
    """
    N, C, H, W = x.shape
    mid = W1.shape[0]
    assert W1.shape == (mid, C) and W2.shape == (C, mid)
    assert b1.shape == (mid,) and b2.shape == (C,)

    avg, mx = _global_pools(x)  # (N, C) f32 each

    # Pad MLP operands to sublane/lane-friendly multiples (zero padding is exact
    # for this MLP; padded rows/cols are sliced off afterwards).
    N_pad = _round_up(N, 8)
    C_pad = _round_up(C, 128)
    mid_pad = _round_up(mid, 128)

    def pad2(a, rows, cols):
        return jnp.pad(a, ((0, rows - a.shape[0]), (0, cols - a.shape[1])))

    pools = jnp.concatenate(
        [pad2(avg, N_pad, C_pad), pad2(mx, N_pad, C_pad)], axis=0)  # (2*N_pad, C_pad)
    w1_p = pad2(W1.T.astype(jnp.float32), C_pad, mid_pad)
    b1_p = pad2(b1.reshape(1, mid).astype(jnp.float32), 1, mid_pad)
    w2_p = pad2(W2.T.astype(jnp.float32), mid_pad, C_pad)
    b2_p = pad2(b2.reshape(1, C).astype(jnp.float32), 1, C_pad)

    sig_p = pl.pallas_call(
        functools.partial(_bottleneck_kernel, half_rows=N_pad),
        out_shape=jax.ShapeDtypeStruct((N_pad, C_pad), jnp.float32),
        in_specs=[pl.BlockSpec(memory_space=pltpu.MemorySpace.VMEM)] * 5,
        out_specs=pl.BlockSpec(memory_space=pltpu.MemorySpace.VMEM),
    )(pools, w1_p, b1_p, w2_p, b2_p)

    sig = sig_p[:N, :C].astype(x.dtype)
    return sig.reshape(N, C, 1, 1)


# ---------------------------------------------------------------------------
# Pure-JAX reference matching the torch module.
# ---------------------------------------------------------------------------
def _channel_attention_ref(x, W1, b1, W2, b2):
    avg = jnp.mean(x, axis=(2, 3))
    mx = jnp.max(x, axis=(2, 3))

    def bottleneck(p):
        h = jnp.maximum(p @ W1.T + b1, 0.0)
        return h @ W2.T + b2

    s = jax.nn.sigmoid(bottleneck(avg) + bottleneck(mx))
    return s[:, :, None, None]


if __name__ == "__main__":
    key = jax.random.PRNGKey(0)
    kx, k1, k2, k3, k4 = jax.random.split(key, 5)

    N, C, H, W = 2, 4, 16, 16
    reduction_ratio = 2
    mid = int(C / float(reduction_ratio))

    x = jax.random.normal(kx, (N, C, H, W), dtype=jnp.float32)
    W1 = 0.3 * jax.random.normal(k1, (mid, C), dtype=jnp.float32)
    b1 = 0.1 * jax.random.normal(k2, (mid,), dtype=jnp.float32)
    W2 = 0.3 * jax.random.normal(k3, (C, mid), dtype=jnp.float32)
    b2 = 0.1 * jax.random.normal(k4, (C,), dtype=jnp.float32)

    out = channel_attention_nopara(x, W1, b1, W2, b2)
    out = jax.block_until_ready(out)

    ref = _channel_attention_ref(x, W1, b1, W2, b2)
    assert out.shape == (N, C, 1, 1)
    # Tolerance allows for MXU default-precision matmul vs. the XLA reference.
    assert jnp.allclose(out, ref, atol=1e-3, rtol=1e-3), float(
        jnp.max(jnp.abs(out - ref))
    )
    print("KERNEL_OK")
</pallas_src>

<mosaic_0001>
module attributes {stable_mosaic.version = 11 : i64} {
  func.func @_pool_kernel(%arg0: i32, %arg1: memref<8x256xf32, #tpu.memory_space<vmem>>, %arg2: memref<8x1xf32, #tpu.memory_space<vmem>>, %arg3: memref<8x1xf32, #tpu.memory_space<vmem>>) attributes {dimension_semantics = [#tpu.dimension_semantics<parallel>], iteration_bounds = array<i64: 1>, scalar_prefetch = 0 : i64, scratch_operands = 0 : i64, tpu.core_type = #tpu.core_type<tc>, window_params = [{transform_indices = @transform_0, window_bounds = array<i64: 8, 256>}, {transform_indices = @transform_1, window_bounds = array<i64: 8, 1>}, {transform_indices = @transform_2, window_bounds = array<i64: 8, 1>}]} {
    %c0 = arith.constant 0 : index
    %c0_0 = arith.constant 0 : index
    %0 = vector.load %arg1[%c0, %c0_0] : memref<8x256xf32, #tpu.memory_space<vmem>>, vector<8x256xf32>
    %cst = arith.constant dense<0.000000e+00> : vector<8xf32>
    %1 = vector.multi_reduction <add>, %0, %cst [1] : vector<8x256xf32> to vector<8xf32>
    %2 = vector.shape_cast %1 : vector<8xf32> to vector<8x1xf32>
    %cst_1 = arith.constant dense<0xFF800000> : vector<8xf32>
    %3 = vector.multi_reduction <maximumf>, %0, %cst_1 [1] : vector<8x256xf32> to vector<8xf32>
    %4 = vector.shape_cast %3 : vector<8xf32> to vector<8x1xf32>
    %cst_2 = arith.constant 3.906250e-03 : f32
    %5 = vector.broadcast %cst_2 : f32 to vector<8x1xf32>
    %6 = arith.mulf %2, %5 : vector<8x1xf32>
    %c0_3 = arith.constant 0 : index
    %c0_4 = arith.constant 0 : index
    %7 = vector.load %arg2[%c0_3, %c0_4] : memref<8x1xf32, #tpu.memory_space<vmem>>, vector<8x1xf32>
    tpu.vector_store %arg2[%c0_3, %c0_4], %6 {strides = array<i32>} : memref<8x1xf32, #tpu.memory_space<vmem>>, vector<8x1xf32>,
    %c0_5 = arith.constant 0 : index
    %c0_6 = arith.constant 0 : index
    %8 = vector.load %arg3[%c0_5, %c0_6] : memref<8x1xf32, #tpu.memory_space<vmem>>, vector<8x1xf32>
    tpu.vector_store %arg3[%c0_5, %c0_6], %4 {strides = array<i32>} : memref<8x1xf32, #tpu.memory_space<vmem>>, vector<8x1xf32>,
    return
  }
  func.func @transform_0(%arg0: i32) -> (i32, i32) {
    %c0_i32 = arith.constant 0 : i32
    %c0_i32_0 = arith.constant 0 : i32
    return %arg0, %c0_i32 : i32, i32
  }
  func.func @transform_1(%arg0: i32) -> (i32, i32) {
    %c0_i32 = arith.constant 0 : i32
    %c0_i32_0 = arith.constant 0 : i32
    return %arg0, %c0_i32 : i32, i32
  }
  func.func @transform_2(%arg0: i32) -> (i32, i32) {
    %c0_i32 = arith.constant 0 : i32
    %c0_i32_0 = arith.constant 0 : i32
    return %arg0, %c0_i32 : i32, i32
  }
}

</mosaic_0001>

<bundles_post_ra>
// kernel: tpu_custom_call.1
= control target key start
LH: loop header
LB: loop body
LE: loop exit
PB: predicated region body
PF: predicated region fallthrough
CT: control target
= control target key end

     0   :  { %8 = vsyncpa [#allocation3], 0  ;;  %s72_s12 = smov [#allocation2]   ;;  %s97_s0 = inlined_call_operand.hbm [shape: f32[8,256], index: 0, kind: input, shape index: {}]   ;;  %s98_s1 = inlined_call_operand.vmem [shape: f32[8,1], index: 1, kind: output, shape index: {0}]   ;;  %s99_s2 = inlined_call_operand.vmem [shape: f32[8,1], index: 2, kind: output, shape index: {1}]  }
   0x1   :  { %s14_s11 = sshll.u32 %s97_s0, 4  ;;  %s16_s13 = sshll.u32 %s72_s12, 4  ;;  %s15_s11 = int_to_ptr.hbm [resolvable:$true] %s14_s11  ;;  %s17_s13 = int_to_ptr.vmem [resolvable:$true] %s16_s13 }
   0x2   :  { %19 = dma.hbm_to_vmem [thread:$0]  %s15_s11, 256, %s17_s13, [#allocation3]  }
   0x3   :  { %70 = dma.done.wait [#allocation3], 256  }
   0x4   :  { %71 = vsyncadd [#allocation3], 4294967040  ;;  %v24_v0 = vld [vmem:[#allocation2] sm:$0xff]  ;;  %v25_v1 = vld [vmem:[#allocation2 + $0x8] sm:$0xff]  ;;  %vm33_vm0 = vcmask 7168  }
   0x5   :  { %v26_v2 = vadd.f32 %v25_v1, %v24_v0  ;;  %v29_v3 = vmax.f32 %v24_v0, %v25_v1 }
   0x7   :  { %27 = vadd.xlane.f32.xlu0 %v26_v2 }
   0xf   :  { %30 = vmax.xlane.f32.xlu0 %v29_v3 }
  0x7a   :  { %v28_v4 = vpop.xlane.xlu0 %27 }
  0x7b   :  { %v32_v5 = vmul.f32 0.00390625, %v28_v4 }
  0x7d   :  { %34 = vst.msk [vmem:[%s98_s1] sm:$0xff] %vm33_vm0, %v32_v5 }
  0x82   :  { %v31_v6 = vpop.xlane.xlu0 %30 }
  0x83   :  { %35 = vst.msk [vmem:[%s99_s2] sm:$0xff] %vm33_vm0, %v31_v6 }
  0x84   :  { %44 = vsyncpa [#allocation3], 1 }

</bundles_post_ra>
